<compile_context>
chip_gen: v6e
topology: v6e:2x2x1
jax: 0.10.0
libtpu: 0.0.40
codegen_flags: <defaults>
</compile_context>

<pallas_src>
import functools

import jax
import jax.numpy as jnp
from jax.experimental import pallas as pl
from jax.experimental.pallas import tpu as pltpu

_MiB = 1024 * 1024


# ---------------------------------------------------------------------------
# Kernel
# ---------------------------------------------------------------------------
def _rmsnorm_kernel(x_ref, scale_ref, *rest, d, d_x, eps, has_bias,
                    approx_recip):
    if has_bias:
        offset_ref, o_ref = rest
    else:
        (o_ref,) = rest

    # x_ref: (tile_rows, d); scale_ref / offset_ref: (1, d)
    x = x_ref[...].astype(jnp.float32)

    if d_x == d:
        ss = jnp.sum(x * x, axis=-1, keepdims=True)
    elif d_x % 128 == 0:
        # Lane-aligned partial norm: static slice skips the dead lanes'
        # squaring and narrows the cross-lane (XLU) reduce.
        xp = x[:, :d_x]
        ss = jnp.sum(xp * xp, axis=-1, keepdims=True)
    else:
        # Non-lane-aligned partial norm: iota mask avoids a ragged slice.
        lane = jax.lax.broadcasted_iota(jnp.int32, x.shape, dimension=1)
        ss = jnp.sum(jnp.where(lane < d_x, x * x, 0.0), axis=-1, keepdims=True)

    # PyTorch: rms_x = ||x||_2 * d_x**(-1/2);  x_normed = x / (rms_x + eps)
    rms = jnp.sqrt(ss) * (d_x ** -0.5)
    # Per-row reciprocal on a (tile_rows, 1) vector. approx=True routes to
    # the EUP slot (otherwise idle); default keeps exact-divide numerics.
    inv = pl.reciprocal(rms + eps, approx=approx_recip)

    out = x * inv * scale_ref[...].astype(jnp.float32)
    if has_bias:
        out = out + offset_ref[...].astype(jnp.float32)
    o_ref[...] = out.astype(o_ref.dtype)


# ---------------------------------------------------------------------------
# Hardware-aware tiling
# ---------------------------------------------------------------------------
def _round_up(x, m):
    return ((x + m - 1) // m) * m


def _sublane_multiple(itemsize):
    # Sub-32-bit dtypes pack along sublanes: (8,128) f32, (16,128) bf16,
    # (32,128) int8/fp8.
    return max(8, 32 // max(int(itemsize), 1))


def _tpu_hw():
    """(vmem_capacity_bytes, grid-sharing TensorCores per device)."""
    vmem_capacity = 64 * _MiB      # conservative fallback (v7x-sized)
    n_cores = 1
    try:
        info = pltpu.get_tpu_info()
        vmem_capacity = int(getattr(info, "vmem_capacity_bytes",
                                    vmem_capacity))
    except Exception:
        pass
    try:
        kind = jax.devices()[0].device_kind.lower()
        if "v7" in kind or "7x" in kind:
            n_cores = 2
    except Exception:
        pass
    if n_cores == 2:
        # v7x: 64 MiB VMEM per TensorCore, regardless of what was reported.
        vmem_capacity = min(vmem_capacity, 64 * _MiB)
    return vmem_capacity, n_cores


def _pick_tile_rows(n_rows, d, itemsize, *, sublane, vmem_capacity, n_cores):
    """Largest sublane-multiple row tile whose VMEM footprint fits budget."""
    # Generation-aware tile budget (leaves headroom for scale/offset,
    # internal scratch and compiler temporaries).
    if vmem_capacity <= 96 * _MiB:          # v7x-class: 64 MiB per TC
        budget = 22 * _MiB
    else:                                   # v5e / v6e: 128 MiB
        budget = 56 * _MiB

    # Per-row VMEM bytes:
    #   double-buffered input tile  : 2 * d * itemsize
    #   double-buffered output tile : 2 * d * itemsize
    #   f32 working copy of the tile (only extra when input is sub-f32)
    per_row = 4 * d * itemsize + (4 * d if itemsize < 4 else 0)
    max_rows = max(sublane, (budget // per_row) // sublane * sublane)
    max_rows = min(max_rows, 32768)         # sanity cap; bytes cap dominates

    needed = _round_up(n_rows, sublane)
    tile = min(max_rows, needed)

    if n_cores >= 2 and needed > sublane:
        # Two TensorCores share the "parallel" row axis: keep >= 2 steps per
        # core so both get work and prefetch/writeback overlaps compute.
        min_steps = 2 * n_cores
        if pl.cdiv(needed, tile) < min_steps:
            tile = max(sublane, _round_up(pl.cdiv(needed, min_steps), sublane))
        # Balance the cores: prefer an even total step count.
        steps = pl.cdiv(needed, tile)
        if steps > 1 and steps % 2 == 1:
            tile = max(sublane,
                       _round_up(pl.cdiv(needed, steps + 1), sublane))
    return int(tile)


# ---------------------------------------------------------------------------
# Wrapper
# ---------------------------------------------------------------------------
def rmsnorm(x, scale, offset=None, *, p=-1.0, eps=1e-8, tile_rows=None,
            approx_reciprocal=False):
    """x: (..., d). scale: (d,). offset: (d,) or None. Matches torch RMSNorm."""
    d = x.shape[-1]
    lead_shape = x.shape[:-1]
    n_rows = 1
    for s in lead_shape:
        n_rows *= s

    # Partial-norm size (static, mirrors the torch.split path).
    if p < 0.0 or p > 1.0:
        d_x = d
    else:
        d_x = int(d * p)
        if d_x == 0:
            raise ValueError(
                "RMSNorm partial size int(d*p) == 0; reference would divide "
                "by zero (NaN). Use a larger p or p < 0 for full norm.")

    x2d = x.reshape(n_rows, d)
    scale2d = scale.reshape(1, d)
    has_bias = offset is not None

    itemsize = jnp.dtype(x.dtype).itemsize
    sublane = _sublane_multiple(itemsize)
    vmem_capacity, n_cores = _tpu_hw()

    if tile_rows is None:
        tile_rows = _pick_tile_rows(n_rows, d, itemsize, sublane=sublane,
                                    vmem_capacity=vmem_capacity,
                                    n_cores=n_cores)
    grid = (pl.cdiv(n_rows, tile_rows),)

    # Explicit VMEM limit: double-buffered in/out tiles + the f32 working
    # copy (for sub-f32 inputs) + headroom, capped below physical VMEM.
    # TODO(synk): no lane-axis (d) tiling fallback for pathologically large d
    # (a single sublane-group tile that exceeds VMEM); not needed for typical
    # hidden sizes.
    tile_bytes = tile_rows * d * itemsize
    f32_tmp_bytes = tile_rows * d * 4 if itemsize < 4 else 0
    vmem_limit = 4 * tile_bytes + f32_tmp_bytes + 8 * _MiB
    vmem_limit = max(vmem_limit, 32 * _MiB)
    vmem_limit = int(min(vmem_limit, vmem_capacity - 8 * _MiB))

    kernel = functools.partial(
        _rmsnorm_kernel, d=d, d_x=d_x, eps=eps, has_bias=has_bias,
        approx_recip=approx_reciprocal)

    in_specs = [
        pl.BlockSpec((tile_rows, d), lambda i: (i, 0)),
        pl.BlockSpec((1, d), lambda i: (0, 0)),
    ]
    args = [x2d, scale2d]
    if has_bias:
        in_specs.append(pl.BlockSpec((1, d), lambda i: (0, 0)))
        args.append(offset.reshape(1, d))

    out2d = pl.pallas_call(
        kernel,
        out_shape=jax.ShapeDtypeStruct((n_rows, d), x.dtype),
        grid_spec=pltpu.PrefetchScalarGridSpec(
            num_scalar_prefetch=0,
            grid=grid,
            in_specs=in_specs,
            out_specs=pl.BlockSpec((tile_rows, d), lambda i: (i, 0)),
        ),
        compiler_params=pltpu.CompilerParams(
            dimension_semantics=("parallel",),
            vmem_limit_bytes=vmem_limit),
    )(*args)

    return out2d.reshape(*lead_shape, d)


# ---------------------------------------------------------------------------
# Pure-JAX reference (mirrors the PyTorch module)
# ---------------------------------------------------------------------------
def rmsnorm_ref(x, scale, offset=None, *, p=-1.0, eps=1e-8):
    d = x.shape[-1]
    if p < 0.0 or p > 1.0:
        d_x = d
        norm_x = jnp.linalg.norm(x, axis=-1, keepdims=True)
    else:
        d_x = int(d * p)
        norm_x = jnp.linalg.norm(x[..., :d_x], axis=-1, keepdims=True)
    rms_x = norm_x * (d_x ** -0.5)
    out = scale * (x / (rms_x + eps))
    if offset is not None:
        out = out + offset
    return out


if __name__ == "__main__":
    # Module-implied small shapes: d = hidden dim; defaults p=-1, bias=False.
    batch, seq, d = 2, 8, 32
    key = jax.random.PRNGKey(0)
    k1, k2 = jax.random.split(key)
    x = jax.random.normal(k1, (batch, seq, d), dtype=jnp.float32)

    # Deterministic params, as in nn.Parameter(torch.ones(d)) / zeros(d).
    scale = jnp.ones((d,), dtype=jnp.float32)
    offset = jnp.zeros((d,), dtype=jnp.float32)

    # Case 1: defaults (p=-1, bias=False)
    out = jax.block_until_ready(rmsnorm(x, scale, p=-1.0, eps=1e-8))
    ref = rmsnorm_ref(x, scale, p=-1.0, eps=1e-8)
    assert out.shape == x.shape and out.dtype == x.dtype
    assert jnp.allclose(out, ref, atol=1e-5, rtol=1e-5)

    # Case 2: partial RMSNorm path (0 < p <= 1 → d_x != d, non-lane-aligned)
    out_p = jax.block_until_ready(rmsnorm(x, scale, p=0.5, eps=1e-8))
    ref_p = rmsnorm_ref(x, scale, p=0.5, eps=1e-8)
    assert jnp.allclose(out_p, ref_p, atol=1e-5, rtol=1e-5)

    # Case 3: bias=True path (offset parameter), random scale
    s2 = jax.random.normal(k2, (d,), dtype=jnp.float32)
    out_b = jax.block_until_ready(rmsnorm(x, s2, offset, p=-1.0, eps=1e-8))
    ref_b = rmsnorm_ref(x, s2, offset, p=-1.0, eps=1e-8)
    assert jnp.allclose(out_b, ref_b, atol=1e-5, rtol=1e-5)

    # Case 4: bf16 input (exercises sub-f32 sublane rounding + f32-copy
    # VMEM budgeting path).
    xb = x.astype(jnp.bfloat16)
    out_bf = jax.block_until_ready(rmsnorm(xb, scale, p=-1.0, eps=1e-8))
    ref_bf = rmsnorm_ref(xb.astype(jnp.float32), scale, p=-1.0, eps=1e-8)
    assert out_bf.dtype == jnp.bfloat16 and out_bf.shape == x.shape
    assert jnp.allclose(out_bf.astype(jnp.float32), ref_bf,
                        atol=3e-2, rtol=3e-2)

    print("KERNEL_OK")
</pallas_src>

<mosaic_0001>
module attributes {stable_mosaic.version = 11 : i64} {
  func.func @_rmsnorm_kernel(%arg0: i32, %arg1: memref<16x32xf32, #tpu.memory_space<vmem>>, %arg2: memref<1x32xf32, #tpu.memory_space<vmem>>, %arg3: memref<16x32xf32, #tpu.memory_space<vmem>>) attributes {dimension_semantics = [#tpu.dimension_semantics<parallel>], iteration_bounds = array<i64: 1>, scalar_prefetch = 0 : i64, scratch_operands = 0 : i64, tpu.core_type = #tpu.core_type<tc>, window_params = [{transform_indices = @transform_0, window_bounds = array<i64: 16, 32>}, {pipeline_mode = #tpu.pipeline_mode<synchronous>, transform_indices = @transform_1, window_bounds = array<i64: 1, 32>}, {transform_indices = @transform_2, window_bounds = array<i64: 16, 32>}]} {
    %c0 = arith.constant 0 : index
    %c0_0 = arith.constant 0 : index
    %0 = vector.load %arg1[%c0, %c0_0] : memref<16x32xf32, #tpu.memory_space<vmem>>, vector<16x32xf32>
    %1 = arith.mulf %0, %0 : vector<16x32xf32>
    %cst = arith.constant dense<0.000000e+00> : vector<16xf32>
    %2 = vector.multi_reduction <add>, %1, %cst [1] : vector<16x32xf32> to vector<16xf32>
    %3 = vector.shape_cast %2 : vector<16xf32> to vector<16x1xf32>
    %4 = math.sqrt %3 : vector<16x1xf32>
    %cst_1 = arith.constant 0.176776692 : f32
    %5 = vector.broadcast %cst_1 : f32 to vector<16x1xf32>
    %6 = arith.mulf %4, %5 : vector<16x1xf32>
    %cst_2 = arith.constant 9.99999993E-9 : f32
    %7 = vector.broadcast %cst_2 : f32 to vector<16x1xf32>
    %8 = arith.addf %6, %7 : vector<16x1xf32>
    %9 = tpu.reciprocal %8 : vector<16x1xf32> -> vector<16x1xf32>
    %10 = vector.broadcast %9 : vector<16x1xf32> to vector<16x32xf32>
    %11 = arith.mulf %0, %10 : vector<16x32xf32>
    %c0_3 = arith.constant 0 : index
    %c0_4 = arith.constant 0 : index
    %12 = vector.load %arg2[%c0_3, %c0_4] : memref<1x32xf32, #tpu.memory_space<vmem>>, vector<1x32xf32>
    %13 = vector.broadcast %12 : vector<1x32xf32> to vector<16x32xf32>
    %14 = arith.mulf %11, %13 : vector<16x32xf32>
    %c0_5 = arith.constant 0 : index
    %c0_6 = arith.constant 0 : index
    %15 = vector.load %arg3[%c0_5, %c0_6] : memref<16x32xf32, #tpu.memory_space<vmem>>, vector<16x32xf32>
    tpu.vector_store %arg3[%c0_5, %c0_6], %14 {strides = array<i32>} : memref<16x32xf32, #tpu.memory_space<vmem>>, vector<16x32xf32>,
    return
  }
  func.func @transform_0(%arg0: i32) -> (i32, i32) {
    %c0_i32 = arith.constant 0 : i32
    %c0_i32_0 = arith.constant 0 : i32
    return %arg0, %c0_i32 : i32, i32
  }
  func.func @transform_1(%arg0: i32) -> (i32, i32) {
    %c0_i32 = arith.constant 0 : i32
    %c0_i32_0 = arith.constant 0 : i32
    %c0_i32_1 = arith.constant 0 : i32
    return %c0_i32, %c0_i32_0 : i32, i32
  }
  func.func @transform_2(%arg0: i32) -> (i32, i32) {
    %c0_i32 = arith.constant 0 : i32
    %c0_i32_0 = arith.constant 0 : i32
    return %arg0, %c0_i32 : i32, i32
  }
}

</mosaic_0001>

<bundles_post_ra>
// kernel: tpu_custom_call.1
= control target key start
LH: loop header
LB: loop body
LE: loop exit
PB: predicated region body
PF: predicated region fallthrough
CT: control target
= control target key end

     0   :  { %7 = vsyncpa [#allocation3], 0  ;;  %s182_s0 = inlined_call_operand.hbm [shape: f32[16,32], index: 0, kind: input, shape index: {}]   ;;  %s183_s1 = inlined_call_operand.vmem [shape: f32[1,32], index: 1, kind: input, shape index: {}]   ;;  %s184_s2 = inlined_call_operand.hbm [shape: f32[16,32], index: 2, kind: output, shape index: {}]  }
   0x1   :  { %8 = vsyncpa [#allocation4], 0  ;;  %s144_s9 = smov [#allocation2]  }
   0x2   :  { %s14_s10 = sshll.u32 %s144_s9, 4  ;;  %s15_s10 = int_to_ptr.vmem [resolvable:$true] %s14_s10 }
   0x3   :  { %s108_s11 = scalar_lea.vmem %s15_s10, 256  ;;  %p113_p1 = scmp.lt.s32.totalorder %s15_s10, %s15_s10 }
   0x4   :  { %p109_p0 = scmp.ne.s32.totalorder %s15_s10, %s108_s11  ;;  %p114_p2 = scmp.lt.s32.totalorder %s108_s11, %s108_s11 }
   0x6   :  { %p115_p3 = por %p114_p2, %p113_p1 }
   0x8   :  { %p116_p4 = pnand %p115_p3, %p109_p0 }
   0xa   :  { %119 = shalt.err (!%p116_p4)
}
   0xb   :  { %s145_s12 = smov 128   ;;  %s146_s13 = smov 8  }
   0xc   :  { %20 = dma.hbm_to_vmem [thread:$0]  %s182_s0, 256, %s15_s10, [#allocation3], %s145_s12, %s145_s12, %s146_s13  }
   0xd   :  { %140 = dma.done.wait [#allocation3], 256  }
   0xe   :  { %141 = vsyncadd [#allocation3], 4294967040  ;;  %v26_v0 = vld [vmem:[#allocation2] sm:$0xff]  ;;  %vm30_vm0 = vcmask 261120   ;;  %v27_v1 = vld [vmem:[#allocation2 + $0x8] sm:$0xff]  ;;  %s147_s17 = smov [#allocation5]  }
   0xf   :  { %v28_v2 = vmul.f32 %v26_v0, %v26_v0  ;;  %v29_v3 = vmul.f32 %v27_v1, %v27_v1  ;;  %v87_v23 = vld [vmem:[%s183_s1] ss:$0 sm:$0xff]  ;;  %s75_s18 = sshll.u32 %s147_s17, 4  ;;  %s76_s18 = int_to_ptr.vmem [resolvable:$true] %s75_s18 }
  0x10   :  { %s120_s19 = scalar_lea.vmem %s76_s18, 256  ;;  %p125_p6 = scmp.lt.s32.totalorder %s76_s18, %s76_s18 }
  0x11   :  { %v31_v4 = vsel %vm30_vm0, %v28_v2, 0.0  ;;  %v34_v5 = vsel %vm30_vm0, %v29_v3, 0.0  ;;  %p121_p5 = scmp.ne.s32.totalorder %s76_s18, %s120_s19  ;;  %p126_p7 = scmp.lt.s32.totalorder %s120_s19, %s120_s19 }
  0x12   :  { %32 = vadd.xlane.f32.xlu0 %v31_v4 }
  0x13   :  { %p127_p8 = por %p126_p7, %p125_p6 }
  0x15   :  { %p128_p9 = pnand %p127_p8, %p121_p5 }
  0x16   :  { %35 = vadd.xlane.f32.xlu0 %v34_v5 }
  0x9b   :  { %v33_v6 = vpop.xlane.xlu0 %32 }
  0x9c   :  { %92 = vrsqrt.f32 %v33_v6  ;;  %vm39_vm1 = vcmp.eq.f32.partialorder %v33_v6, inf  ;;  %v42_v10 = vand.u32 2147483648, %v33_v6  ;;  %vm41_vm2 = vcmp.eq.f32.partialorder %v33_v6, 0.0 }
  0x9f   :  { %v36_v7 = vpop.xlane.xlu0 %35 }
  0xa0   :  { %94 = vrsqrt.f32 %v36_v7  ;;  %vm46_vm3 = vcmp.eq.f32.partialorder %v36_v7, inf  ;;  %v49_v16 = vand.u32 2147483648, %v36_v7  ;;  %vm48_vm4 = vcmp.eq.f32.partialorder %v36_v7, 0.0 }
  0xa9   :  { %v93_v8 = vpop.eup %92 }
  0xaa   :  { %v38_v9 = vmul.f32 %v93_v8, %v33_v6 }
  0xac   :  { %v40_v11 = vsel %vm39_vm1, %v33_v6, %v38_v9 }
  0xad   :  { %v95_v12 = vpop.eup %94  ;;  %v43_v13 = vsel %vm41_vm2, %v42_v10, %v40_v11 }
  0xae   :  { %v51_v14 = vmul.f32 0.17677669, %v43_v13  ;;  %v45_v15 = vmul.f32 %v95_v12, %v36_v7 }
  0xb0   :  { %v53_v17 = vadd.f32 1e-08, %v51_v14  ;;  %v47_v18 = vsel %vm46_vm3, %v36_v7, %v45_v15 }
  0xb1   :  { %v50_v19 = vsel %vm48_vm4, %v49_v16, %v47_v18 }
  0xb2   :  { %96 = vrcp.f32 %v53_v17  ;;  %v52_v20 = vmul.f32 0.17677669, %v50_v19 }
  0xb4   :  { %v54_v21 = vadd.f32 1e-08, %v52_v20 }
  0xb6   :  { %98 = vrcp.f32 %v54_v21 }
  0xbf   :  { %v97_v22 = vpop.eup %96 }
  0xc0   :  { %v57_v24 = vmul.f32 %v97_v22, %v26_v0 }
  0xc2   :  { %v66_v25 = vmul.f32 %v87_v23, %v57_v24 }
  0xc3   :  { %v99_v26 = vpop.eup %98 }
  0xc4   :  { %v58_v27 = vmul.f32 %v99_v26, %v27_v1  ;;  %68 = vst.msk [vmem:[#allocation5] sm:$0xff] %vm30_vm0, %v66_v25 }
  0xc6   :  { %v67_v28 = vmul.f32 %v87_v23, %v58_v27 }
  0xc8   :  { %69 = vst.msk [vmem:[#allocation5 + $0x8] sm:$0xff] %vm30_vm0, %v67_v28 }
  0xc9   :  { %131 = shalt.err (!%p128_p9)
}
  0xca   :  { %81 = dma.vmem_to_hbm [thread:$0]  %s76_s18, 256, %s184_s2, [#allocation4], %s145_s12, %s145_s12, %s146_s13  }
  0xcb   :  { %142 = dma.done.wait [#allocation4], 256  }
  0xcc   :  { %143 = vsyncadd [#allocation4], 4294967040 }
  0xcd   :  { %85 = vsyncpa [#allocation3], 1 }
  0xce   :  { %86 = vsyncpa [#allocation4], 1 }

</bundles_post_ra>
